<compile_context>
chip_gen: v6e
topology: v6e:2x2x1
jax: 0.10.0
libtpu: 0.0.40
codegen_flags: <defaults>
</compile_context>

<pallas_src>
import functools

import jax
import jax.numpy as jnp
from jax import lax
from jax.experimental import pallas as pl
from jax.experimental.pallas import tpu as pltpu

BN_EPS = 1e-5
LANE = 128
_NEG_BIG = float(jnp.finfo(jnp.float32).min)   # ReLU "identity" floor for layer 0


def _round_up(v, m):
    return (v + m - 1) // m * m


# ------------------------------ fused kernel --------------------------------


def _fused_mlp_kernel(
    x_ref,        # (tile_n, D)    padded input rows (consumed only at layer 0)
    w_ref,        # (D, D)         bf16 weight of layer l (zero padded)
    scale_ref,    # (1, D)         gamma of layer l-1 (identity at l == 0)
    shift_ref,    # (1, D)         beta  of layer l-1 (identity at l == 0)
    bias_ref,     # (1, D_out)     bias of the FINAL layer only
    o_ref,        # (tile_n, D_out) output rows (written only at last layer)
    act_ref,      # (n_pad, D)     bf16 resident pre-BN activation z
    sum_ref,      # (8, D)         per-sublane partial sum of (z - c)
    sumsq_ref,    # (8, D)         per-sublane partial sum of (z - c)^2
    c_ref,        # (1, D)         moment shift: first row of this layer's z
    mean_ref,     # (1, D)         finalized batch mean of previous layer's z
    invstd_ref,   # (1, D)         finalized rsqrt(var + eps)
    *,
    num_layers,
    num_tiles,
    tile_n,
    n_real,
    has_pad,
    d_out,
    eps,
):
    l = pl.program_id(0)          # layer (sequential phase)
    t = pl.program_id(1)          # row tile
    last_layer = num_layers - 1

    # --- init at the very first grid step ---------------------------------
    @pl.when((l == 0) & (t == 0))
    def _():
        sum_ref[...] = jnp.zeros_like(sum_ref)
        sumsq_ref[...] = jnp.zeros_like(sumsq_ref)
        mean_ref[...] = jnp.zeros_like(mean_ref)     # identity BN for layer 0
        invstd_ref[...] = jnp.ones_like(invstd_ref)

    # --- finalize previous layer's batch-global stats at each layer start --
    @pl.when((l > 0) & (t == 0))
    def _():
        inv_n = jnp.float32(1.0 / n_real)
        s1 = jnp.sum(sum_ref[...], axis=0, keepdims=True) * inv_n     # E[z-c]
        s2 = jnp.sum(sumsq_ref[...], axis=0, keepdims=True) * inv_n   # E[(z-c)^2]
        var = jnp.maximum(s2 - s1 * s1, 0.0)                          # Var(z)
        mean_ref[...] = c_ref[...] + s1
        invstd_ref[...] = lax.rsqrt(var + eps)
        sum_ref[...] = jnp.zeros_like(sum_ref)
        sumsq_ref[...] = jnp.zeros_like(sumsq_ref)

    row_start = pl.multiple_of(t * tile_n, tile_n)

    # --- prime the resident activation scratch with x at layer 0 -----------
    @pl.when(l == 0)
    def _():
        act_ref[pl.ds(row_start, tile_n), :] = x_ref[...].astype(act_ref.dtype)

    # --- layer input: BN(prev z) -> affine -> ReLU (identity at layer 0) ---
    prev = act_ref[pl.ds(row_start, tile_n), :].astype(jnp.float32)
    relu_floor = jnp.where(l == 0, jnp.float32(_NEG_BIG), jnp.float32(0.0))
    a = jnp.maximum(
        (prev - mean_ref[...]) * invstd_ref[...] * scale_ref[...] + shift_ref[...],
        relu_floor,
    )

    # bf16 inputs, f32 MXU accumulation.  Hidden-layer Linear biases dropped
    # (exactly cancelled by the BatchNorm mean subtraction).
    z = jnp.dot(a.astype(w_ref.dtype), w_ref[...],
                preferred_element_type=jnp.float32)

    if num_layers > 1:
        def _fold_rows(v):
            # (tile_n, D) -> (8, D) partial sums with pure elementwise adds;
            # the cross-sublane reduce is deferred to the layer boundary.
            if tile_n == 8:
                return v
            return v.reshape(tile_n // 8, 8, v.shape[-1]).sum(axis=0)

        def _accumulate(masked):
            # Shift constant for this layer's moments = first row of tile 0's z
            # (row 0 is always a real row).
            @pl.when(t == 0)
            def _():
                c_ref[...] = z[0:1, :]
            act_ref[pl.ds(row_start, tile_n), :] = z.astype(act_ref.dtype)
            zc = z - c_ref[...]
            if masked:
                row_ids = (lax.broadcasted_iota(jnp.int32, (tile_n, 1), 0)
                           + t * tile_n)
                zc = jnp.where(row_ids < n_real, zc, 0.0)
            sum_ref[...] += _fold_rows(zc)
            sumsq_ref[...] += _fold_rows(zc * zc)

        is_hidden = l < last_layer
        if not has_pad:
            @pl.when(is_hidden)
            def _():
                _accumulate(False)
        else:
            # Only the last row tile can contain padded rows: keep the masking
            # cost off the fast path.
            @pl.when(is_hidden & (t < num_tiles - 1))
            def _():
                _accumulate(False)

            @pl.when(is_hidden & (t == num_tiles - 1))
            def _():
                _accumulate(True)

    # --- output only on the last layer pass (single HBM writeback) ---------
    @pl.when(l == last_layer)
    def _():
        o_ref[...] = (z[:, :d_out] + bias_ref[...]).astype(o_ref.dtype)


# ------------------------------ wrappers -------------------------------------


def _physical_vmem_bytes():
    try:
        return int(pltpu.get_tpu_info().vmem_capacity_bytes)
    except Exception:
        return 64 * 1024 * 1024   # conservative: v7x has 64 MiB per TC


def _vmem_limit_bytes(n_pad, tile_n, d, d_out):
    est = (
        n_pad * d * 2              # bf16 resident activation scratch
        + 2 * tile_n * d * 4       # x tile, double-buffered
        + 2 * tile_n * d_out * 4   # out tile, double-buffered
        + 2 * d * d * 2            # bf16 weight slab, double-buffered
        + 8 * 2 * d * 4            # affine / bias tiles, double-buffered
        + (2 * 8 + 3) * d * 4      # BN stat scratch
    )
    cap = min(_physical_vmem_bytes() - (8 << 20), 100 << 20)  # Mosaic headroom
    return int(min(max(2 * est, 16 << 20), cap))


@functools.partial(jax.jit, static_argnames=("output_dim", "tile_n"))
def mlp_forward(x, fused, *, output_dim, tile_n=None):
    """Fused MLP forward: one pallas_call for every layer."""
    w_all = fused["w_all"]       # (L, D, D)  bf16
    scale = fused["scale"]       # (L, 1, D)  f32
    shift = fused["shift"]       # (L, 1, D)  f32
    bias = fused["bias"]         # (1, D_out) f32 (final layer bias)

    num_layers, d, _ = w_all.shape
    d_out = bias.shape[1]
    n_real = x.shape[0]
    if tile_n is None:
        # TODO(synk): pick 256 on v7x (VMEM) / 512+ on v5e-v6e automatically.
        tile_n = min(_round_up(n_real, 8), 512)
    assert tile_n % 8 == 0, tile_n
    n_pad = _round_up(n_real, tile_n)
    num_tiles = n_pad // tile_n
    has_pad = n_pad != n_real
    last_layer = num_layers - 1

    x_pad = jnp.zeros((n_pad, d), jnp.float32)
    x_pad = x_pad.at[:n_real, : x.shape[1]].set(x.astype(jnp.float32))

    kernel = functools.partial(
        _fused_mlp_kernel,
        num_layers=num_layers,
        num_tiles=num_tiles,
        tile_n=tile_n,
        n_real=n_real,
        has_pad=has_pad,
        d_out=d_out,
        eps=BN_EPS,
    )

    out = pl.pallas_call(
        kernel,
        out_shape=jax.ShapeDtypeStruct((n_pad, d_out), jnp.float32),
        grid_spec=pltpu.PrefetchScalarGridSpec(
            num_scalar_prefetch=0,
            grid=(num_layers, num_tiles),
            in_specs=[
                # x: block index frozen for l > 0 -> no per-layer HBM re-read.
                pl.BlockSpec((tile_n, d),
                             lambda l, t: (jnp.where(l == 0, t, 0), 0)),
                pl.BlockSpec((None, d, d), lambda l, t: (l, 0, 0)),   # W[l]
                pl.BlockSpec((None, 1, d), lambda l, t: (l, 0, 0)),   # gamma[l-1]
                pl.BlockSpec((None, 1, d), lambda l, t: (l, 0, 0)),   # beta[l-1]
                pl.BlockSpec((1, d_out), lambda l, t: (0, 0)),        # final bias
            ],
            # output: block index frozen for l < L-1 -> HBM written once.
            out_specs=pl.BlockSpec(
                (tile_n, d_out),
                lambda l, t: (jnp.where(l == last_layer, t, 0), 0)),
            scratch_shapes=[
                pltpu.VMEM((n_pad, d), jnp.bfloat16),  # resident pre-BN activations
                pltpu.VMEM((8, d), jnp.float32),       # partial sum of (z - c)
                pltpu.VMEM((8, d), jnp.float32),       # partial sum of (z - c)^2
                pltpu.VMEM((1, d), jnp.float32),       # moment shift c
                pltpu.VMEM((1, d), jnp.float32),       # finalized mean
                pltpu.VMEM((1, d), jnp.float32),       # finalized rsqrt(var+eps)
            ],
        ),
        compiler_params=pltpu.CompilerParams(
            # Both axes sequential: layers chain and row tiles accumulate BN
            # stats into shared scratch.  TODO(synk): v7x dual-TC split.
            dimension_semantics=("arbitrary", "arbitrary"),
            vmem_limit_bytes=_vmem_limit_bytes(n_pad, tile_n, d, d_out),
        ),
    )(x_pad, w_all, scale, shift, bias)

    return out[:n_real, :output_dim]


# ------------------------------ parameters -----------------------------------


def init_mlp_params(key, num_layers, input_dim, hidden_dim, output_dim):
    """Deterministic synthetic parameters matching the PyTorch module's shapes."""
    if num_layers < 1:
        raise ValueError("num_layers must be >= 1")

    if num_layers == 1:
        dims = [(input_dim, output_dim)]
    else:
        dims = [(input_dim, hidden_dim)]
        dims += [(hidden_dim, hidden_dim)] * (num_layers - 2)
        dims += [(hidden_dim, output_dim)]

    params = {"linears": [], "norms": []}
    for i, (fin, fout) in enumerate(dims):
        key, kw, kb = jax.random.split(key, 3)
        bound = 1.0 / (fin ** 0.5)  # nn.Linear default init range
        # Stored as [in, out] (transposed from PyTorch's [out, in]).
        w = jax.random.uniform(kw, (fin, fout), jnp.float32, -bound, bound)
        b = jax.random.uniform(kb, (1, fout), jnp.float32, -bound, bound)
        params["linears"].append((w, b))
        if num_layers > 1 and i < num_layers - 1:
            gamma = jnp.ones((1, fout), jnp.float32)   # BatchNorm1d weight
            beta = jnp.zeros((1, fout), jnp.float32)   # BatchNorm1d bias
            params["norms"].append((gamma, beta))
    return params


def prepare_fused_params(params):
    """Stack + zero-pad per-layer parameters into lane-dense 128-multiple slabs."""
    linears = params["linears"]
    norms = params["norms"]
    num_layers = len(linears)
    dmax = max(max(w.shape) for w, _ in linears)
    d = _round_up(dmax, LANE)
    output_dim = linears[-1][0].shape[1]
    d_out = _round_up(output_dim, LANE)   # narrower output slab than d

    w_all = jnp.zeros((num_layers, d, d), jnp.float32)
    for i, (w, _) in enumerate(linears):
        fin, fout = w.shape
        w_all = w_all.at[i, :fin, :fout].set(w)

    # scale/shift entry l is the BN affine applied BEFORE layer l's matmul
    # (gamma/beta of hidden layer l-1); entry 0 is an identity.
    scale = jnp.ones((num_layers, 1, d), jnp.float32)
    shift = jnp.zeros((num_layers, 1, d), jnp.float32)
    for i, (gamma, beta) in enumerate(norms):
        scale = scale.at[i + 1, :, : gamma.shape[1]].set(gamma)
        shift = shift.at[i + 1, :, : beta.shape[1]].set(beta)

    bias = jnp.zeros((1, d_out), jnp.float32)
    b_last = linears[-1][1]
    bias = bias.at[:, : b_last.shape[1]].set(b_last)

    return {
        "w_all": w_all.astype(jnp.bfloat16),  # bf16 MXU inputs, f32 accumulation
        "scale": scale,
        "shift": shift,
        "bias": bias,
    }


# ------------------------------ reference ------------------------------------


def mlp_reference(params, x, num_layers):
    """Pure-JAX reference: PyTorch training-mode semantics with bf16 matmul
    inputs / f32 accumulation (matching the kernel's MXU numerics)."""
    def mm(a, w):
        return jnp.dot(a.astype(jnp.bfloat16), w.astype(jnp.bfloat16),
                       preferred_element_type=jnp.float32)

    if num_layers == 1:
        w, b = params["linears"][0]
        return mm(x, w) + b
    h = x
    for i in range(num_layers - 1):
        w, b = params["linears"][i]
        gamma, beta = params["norms"][i]
        z = mm(h, w) + b
        mean = jnp.mean(z, axis=0, keepdims=True)
        var = jnp.mean((z - mean) ** 2, axis=0, keepdims=True)
        h = jnp.maximum((z - mean) * lax.rsqrt(var + BN_EPS) * gamma + beta, 0.0)
    w, b = params["linears"][-1]
    return mm(h, w) + b


# ------------------------------ main ------------------------------------------


if __name__ == "__main__":
    num_layers = 3
    input_dim, hidden_dim, output_dim = 16, 32, 8
    batch = 12  # deliberately not a multiple of tile_n: exercises row masking

    key = jax.random.PRNGKey(0)
    key, kx = jax.random.split(key)
    x = jax.random.normal(kx, (batch, input_dim), jnp.float32)

    params = init_mlp_params(key, num_layers, input_dim, hidden_dim, output_dim)
    fused = prepare_fused_params(params)

    # tile_n=8 -> two row tiles: exercises cross-tile BN stat accumulation and
    # the masked last-tile path.
    out = mlp_forward(x, fused, output_dim=output_dim, tile_n=8)
    out = jax.block_until_ready(out)

    ref = mlp_reference(params, x, num_layers)
    assert out.shape == (batch, output_dim), out.shape
    max_err = float(jnp.max(jnp.abs(out - ref)))
    assert jnp.allclose(out, ref, atol=3e-2, rtol=3e-2), max_err

    print("KERNEL_OK")
</pallas_src>

<mosaic_0001>
module attributes {stable_mosaic.version = 11 : i64} {
  func.func @_fused_mlp_kernel(%arg0: i32, %arg1: i32, %arg2: memref<8x128xf32, #tpu.memory_space<vmem>>, %arg3: memref<1x128x128xbf16, #tpu.memory_space<vmem>>, %arg4: memref<1x1x128xf32, #tpu.memory_space<vmem>>, %arg5: memref<1x1x128xf32, #tpu.memory_space<vmem>>, %arg6: memref<1x128xf32, #tpu.memory_space<vmem>>, %arg7: memref<8x128xf32, #tpu.memory_space<vmem>>, %arg8: memref<16x128xbf16, #tpu.memory_space<vmem>>, %arg9: memref<8x128xf32, #tpu.memory_space<vmem>>, %arg10: memref<8x128xf32, #tpu.memory_space<vmem>>, %arg11: memref<1x128xf32, #tpu.memory_space<vmem>>, %arg12: memref<1x128xf32, #tpu.memory_space<vmem>>, %arg13: memref<1x128xf32, #tpu.memory_space<vmem>>) attributes {dimension_semantics = [#tpu.dimension_semantics<arbitrary>, #tpu.dimension_semantics<arbitrary>], iteration_bounds = array<i64: 3, 2>, scalar_prefetch = 0 : i64, scratch_operands = 6 : i64, tpu.core_type = #tpu.core_type<tc>, window_params = [{transform_indices = @transform_0, window_bounds = array<i64: 8, 128>}, {transform_indices = @transform_1, window_bounds = array<i64: 1, 128, 128>}, {transform_indices = @transform_2, window_bounds = array<i64: 1, 1, 128>}, {transform_indices = @transform_3, window_bounds = array<i64: 1, 1, 128>}, {pipeline_mode = #tpu.pipeline_mode<synchronous>, transform_indices = @transform_4, window_bounds = array<i64: 1, 128>}, {transform_indices = @transform_5, window_bounds = array<i64: 8, 128>}]} {
    %c0_i32 = arith.constant 0 : i32
    %0 = arith.cmpi eq, %arg0, %c0_i32 : i32
    %c0_i32_0 = arith.constant 0 : i32
    %1 = arith.cmpi eq, %arg1, %c0_i32_0 : i32
    %2 = arith.andi %0, %1 : i1
    %3 = arith.extui %2 : i1 to i32
    %c0_i32_1 = arith.constant 0 : i32
    %4 = arith.cmpi ne, %3, %c0_i32_1 : i32
    scf.if %4 {
      %cst_28 = arith.constant 0.000000e+00 : f32
      %52 = vector.broadcast %cst_28 : f32 to vector<8x128xf32>
      %c0_29 = arith.constant 0 : index
      %c0_30 = arith.constant 0 : index
      %53 = vector.load %arg9[%c0_29, %c0_30] : memref<8x128xf32, #tpu.memory_space<vmem>>, vector<8x128xf32>
      tpu.vector_store %arg9[%c0_29, %c0_30], %52 {strides = array<i32>} : memref<8x128xf32, #tpu.memory_space<vmem>>, vector<8x128xf32>,
      %cst_31 = arith.constant 0.000000e+00 : f32
      %54 = vector.broadcast %cst_31 : f32 to vector<8x128xf32>
      %c0_32 = arith.constant 0 : index
      %c0_33 = arith.constant 0 : index
      %55 = vector.load %arg10[%c0_32, %c0_33] : memref<8x128xf32, #tpu.memory_space<vmem>>, vector<8x128xf32>
      tpu.vector_store %arg10[%c0_32, %c0_33], %54 {strides = array<i32>} : memref<8x128xf32, #tpu.memory_space<vmem>>, vector<8x128xf32>,
      %cst_34 = arith.constant 0.000000e+00 : f32
      %56 = vector.broadcast %cst_34 : f32 to vector<1x128xf32>
      %c0_35 = arith.constant 0 : index
      %c0_36 = arith.constant 0 : index
      %57 = vector.load %arg12[%c0_35, %c0_36] : memref<1x128xf32, #tpu.memory_space<vmem>>, vector<1x128xf32>
      tpu.vector_store %arg12[%c0_35, %c0_36], %56 {strides = array<i32>} : memref<1x128xf32, #tpu.memory_space<vmem>>, vector<1x128xf32>,
      %cst_37 = arith.constant 1.000000e+00 : f32
      %58 = vector.broadcast %cst_37 : f32 to vector<1x128xf32>
      %c0_38 = arith.constant 0 : index
      %c0_39 = arith.constant 0 : index
      %59 = vector.load %arg13[%c0_38, %c0_39] : memref<1x128xf32, #tpu.memory_space<vmem>>, vector<1x128xf32>
      tpu.vector_store %arg13[%c0_38, %c0_39], %58 {strides = array<i32>} : memref<1x128xf32, #tpu.memory_space<vmem>>, vector<1x128xf32>,
    } else {
    }
    %c0_i32_2 = arith.constant 0 : i32
    %5 = arith.cmpi sgt, %arg0, %c0_i32_2 : i32
    %c0_i32_3 = arith.constant 0 : i32
    %6 = arith.cmpi eq, %arg1, %c0_i32_3 : i32
    %7 = arith.andi %5, %6 : i1
    %8 = arith.extui %7 : i1 to i32
    %c0_i32_4 = arith.constant 0 : i32
    %9 = arith.cmpi ne, %8, %c0_i32_4 : i32
    scf.if %9 {
      %c0_28 = arith.constant 0 : index
      %c0_29 = arith.constant 0 : index
      %52 = vector.load %arg9[%c0_28, %c0_29] : memref<8x128xf32, #tpu.memory_space<vmem>>, vector<8x128xf32>
      %cst_30 = arith.constant dense<0.000000e+00> : vector<128xf32>
      %53 = vector.multi_reduction <add>, %52, %cst_30 [0] : vector<8x128xf32> to vector<128xf32>
      %54 = vector.shape_cast %53 : vector<128xf32> to vector<1x128xf32>
      %cst_31 = arith.constant 0.0833333358 : f32
      %55 = vector.broadcast %cst_31 : f32 to vector<1x128xf32>
      %56 = arith.mulf %54, %55 : vector<1x128xf32>
      %c0_32 = arith.constant 0 : index
      %c0_33 = arith.constant 0 : index
      %57 = vector.load %arg10[%c0_32, %c0_33] : memref<8x128xf32, #tpu.memory_space<vmem>>, vector<8x128xf32>
      %cst_34 = arith.constant dense<0.000000e+00> : vector<128xf32>
      %58 = vector.multi_reduction <add>, %57, %cst_34 [0] : vector<8x128xf32> to vector<128xf32>
      %59 = vector.shape_cast %58 : vector<128xf32> to vector<1x128xf32>
      %cst_35 = arith.constant 0.0833333358 : f32
      %60 = vector.broadcast %cst_35 : f32 to vector<1x128xf32>
      %61 = arith.mulf %59, %60 : vector<1x128xf32>
      %62 = arith.mulf %56, %56 : vector<1x128xf32>
      %63 = arith.subf %61, %62 : vector<1x128xf32>
      %cst_36 = arith.constant 0.000000e+00 : f32
      %64 = vector.broadcast %cst_36 : f32 to vector<1x128xf32>
      %65 = arith.maximumf %63, %64 : vector<1x128xf32>
      %c0_37 = arith.constant 0 : index
      %c0_38 = arith.constant 0 : index
      %66 = vector.load %arg11[%c0_37, %c0_38] : memref<1x128xf32, #tpu.memory_space<vmem>>, vector<1x128xf32>
      %67 = arith.addf %66, %56 : vector<1x128xf32>
      %c0_39 = arith.constant 0 : index
      %c0_40 = arith.constant 0 : index
      %68 = vector.load %arg12[%c0_39, %c0_40] : memref<1x128xf32, #tpu.memory_space<vmem>>, vector<1x128xf32>
      tpu.vector_store %arg12[%c0_39, %c0_40], %67 {strides = array<i32>} : memref<1x128xf32, #tpu.memory_space<vmem>>, vector<1x128xf32>,
      %cst_41 = arith.constant 9.99999974E-6 : f32
      %69 = vector.broadcast %cst_41 : f32 to vector<1x128xf32>
      %70 = arith.addf %65, %69 : vector<1x128xf32>
      %71 = math.rsqrt %70 : vector<1x128xf32>
      %c0_42 = arith.constant 0 : index
      %c0_43 = arith.constant 0 : index
      %72 = vector.load %arg13[%c0_42, %c0_43] : memref<1x128xf32, #tpu.memory_space<vmem>>, vector<1x128xf32>
      tpu.vector_store %arg13[%c0_42, %c0_43], %71 {strides = array<i32>} : memref<1x128xf32, #tpu.memory_space<vmem>>, vector<1x128xf32>,
      %cst_44 = arith.constant 0.000000e+00 : f32
      %73 = vector.broadcast %cst_44 : f32 to vector<8x128xf32>
      %c0_45 = arith.constant 0 : index
      %c0_46 = arith.constant 0 : index
      %74 = vector.load %arg9[%c0_45, %c0_46] : memref<8x128xf32, #tpu.memory_space<vmem>>, vector<8x128xf32>
      tpu.vector_store %arg9[%c0_45, %c0_46], %73 {strides = array<i32>} : memref<8x128xf32, #tpu.memory_space<vmem>>, vector<8x128xf32>,
      %cst_47 = arith.constant 0.000000e+00 : f32
      %75 = vector.broadcast %cst_47 : f32 to vector<8x128xf32>
      %c0_48 = arith.constant 0 : index
      %c0_49 = arith.constant 0 : index
      %76 = vector.load %arg10[%c0_48, %c0_49] : memref<8x128xf32, #tpu.memory_space<vmem>>, vector<8x128xf32>
      tpu.vector_store %arg10[%c0_48, %c0_49], %75 {strides = array<i32>} : memref<8x128xf32, #tpu.memory_space<vmem>>, vector<8x128xf32>,
    } else {
    }
    %c8_i32 = arith.constant 8 : i32
    %10 = arith.muli %arg1, %c8_i32 : i32
    %11 = tpu.assume_multiple %10, 8 : i32
    %c0_i32_5 = arith.constant 0 : i32
    %12 = arith.cmpi eq, %arg0, %c0_i32_5 : i32
    %13 = arith.extui %12 : i1 to i32
    %c0_i32_6 = arith.constant 0 : i32
    %14 = arith.cmpi ne, %13, %c0_i32_6 : i32
    scf.if %14 {
      %c0_28 = arith.constant 0 : index
      %c0_29 = arith.constant 0 : index
      %52 = vector.load %arg2[%c0_28, %c0_29] : memref<8x128xf32, #tpu.memory_space<vmem>>, vector<8x128xf32>
      %53 = arith.truncf %52 : vector<8x128xf32> to vector<8x128xbf16>
      %54 = arith.index_cast %11 : i32 to index
      %c0_30 = arith.constant 0 : index
      %55 = vector.load %arg8[%54, %c0_30] : memref<16x128xbf16, #tpu.memory_space<vmem>>, vector<8x128xbf16>
      tpu.vector_store %arg8[%54, %c0_30], %53 {strides = array<i32>} : memref<16x128xbf16, #tpu.memory_space<vmem>>, vector<8x128xbf16>,
    } else {
    }
    %15 = arith.index_cast %11 : i32 to index
    %c0 = arith.constant 0 : index
    %16 = vector.load %arg8[%15, %c0] : memref<16x128xbf16, #tpu.memory_space<vmem>>, vector<8x128xbf16>
    %17 = arith.extf %16 : vector<8x128xbf16> to vector<8x128xf32>
    %c0_i32_7 = arith.constant 0 : i32
    %18 = arith.cmpi eq, %arg0, %c0_i32_7 : i32
    %cst = arith.constant -3.40282347E+38 : f32
    %cst_8 = arith.constant 0.000000e+00 : f32
    %19 = arith.select %18, %cst, %cst_8 : f32
    %c0_9 = arith.constant 0 : index
    %c0_10 = arith.constant 0 : index
    %20 = vector.load %arg12[%c0_9, %c0_10] : memref<1x128xf32, #tpu.memory_space<vmem>>, vector<1x128xf32>
    %21 = vector.broadcast %20 : vector<1x128xf32> to vector<8x128xf32>
    %22 = arith.subf %17, %21 : vector<8x128xf32>
    %c0_11 = arith.constant 0 : index
    %c0_12 = arith.constant 0 : index
    %23 = vector.load %arg13[%c0_11, %c0_12] : memref<1x128xf32, #tpu.memory_space<vmem>>, vector<1x128xf32>
    %24 = vector.broadcast %23 : vector<1x128xf32> to vector<8x128xf32>
    %25 = arith.mulf %22, %24 : vector<8x128xf32>
    %c0_13 = arith.constant 0 : index
    %c0_14 = arith.constant 0 : index
    %c0_15 = arith.constant 0 : index
    %26 = vector.load %arg4[%c0_13, %c0_14, %c0_15] : memref<1x1x128xf32, #tpu.memory_space<vmem>>, vector<1x1x128xf32>
    %27 = vector.shape_cast %26 : vector<1x1x128xf32> to vector<1x128xf32>
    %28 = vector.broadcast %27 : vector<1x128xf32> to vector<8x128xf32>
    %29 = arith.mulf %25, %28 : vector<8x128xf32>
    %c0_16 = arith.constant 0 : index
    %c0_17 = arith.constant 0 : index
    %c0_18 = arith.constant 0 : index
    %30 = vector.load %arg5[%c0_16, %c0_17, %c0_18] : memref<1x1x128xf32, #tpu.memory_space<vmem>>, vector<1x1x128xf32>
    %31 = vector.shape_cast %30 : vector<1x1x128xf32> to vector<1x128xf32>
    %32 = vector.broadcast %31 : vector<1x128xf32> to vector<8x128xf32>
    %33 = arith.addf %29, %32 : vector<8x128xf32>
    %34 = vector.broadcast %19 : f32 to vector<8x128xf32>
    %35 = arith.maximumf %33, %34 : vector<8x128xf32>
    %36 = arith.truncf %35 : vector<8x128xf32> to vector<8x128xbf16>
    %c0_19 = arith.constant 0 : index
    %c0_20 = arith.constant 0 : index
    %c0_21 = arith.constant 0 : index
    %37 = vector.load %arg3[%c0_19, %c0_20, %c0_21] : memref<1x128x128xbf16, #tpu.memory_space<vmem>>, vector<1x128x128xbf16>
    %38 = vector.shape_cast %37 : vector<1x128x128xbf16> to vector<128x128xbf16>
    %cst_22 = arith.constant dense<0.000000e+00> : vector<8x128xf32>
    %39 = tpu.matmul %36, %38, %cst_22 {dimension_numbers = #tpu.dot_dimension_numbers<[1], [0], [0], [1], [0, 0, 1, 1], [], []>} : vector<8x128xbf16>, vector<128x128xbf16>, vector<8x128xf32> -> vector<8x128xf32>
    %c2_i32 = arith.constant 2 : i32
    %40 = arith.cmpi slt, %arg0, %c2_i32 : i32
    %c1_i32 = arith.constant 1 : i32
    %41 = arith.cmpi slt, %arg1, %c1_i32 : i32
    %42 = arith.andi %40, %41 : i1
    %43 = arith.extui %42 : i1 to i32
    %c0_i32_23 = arith.constant 0 : i32
    %44 = arith.cmpi ne, %43, %c0_i32_23 : i32
    scf.if %44 {
      %c0_i32_28 = arith.constant 0 : i32
      %52 = arith.cmpi eq, %arg1, %c0_i32_28 : i32
      %53 = arith.extui %52 : i1 to i32
      %c0_i32_29 = arith.constant 0 : i32
      %54 = arith.cmpi ne, %53, %c0_i32_29 : i32
      scf.if %54 {
        %68 = vector.extract_strided_slice %39 {offsets = [0, 0], sizes = [1, 128], strides = [1, 1]} : vector<8x128xf32> to vector<1x128xf32>
        %c0_41 = arith.constant 0 : index
        %c0_42 = arith.constant 0 : index
        %69 = vector.load %arg11[%c0_41, %c0_42] : memref<1x128xf32, #tpu.memory_space<vmem>>, vector<1x128xf32>
        tpu.vector_store %arg11[%c0_41, %c0_42], %68 {strides = array<i32>} : memref<1x128xf32, #tpu.memory_space<vmem>>, vector<1x128xf32>,
      } else {
      }
      %55 = arith.truncf %39 : vector<8x128xf32> to vector<8x128xbf16>
      %56 = arith.index_cast %11 : i32 to index
      %c0_30 = arith.constant 0 : index
      %57 = vector.load %arg8[%56, %c0_30] : memref<16x128xbf16, #tpu.memory_space<vmem>>, vector<8x128xbf16>
      tpu.vector_store %arg8[%56, %c0_30], %55 {strides = array<i32>} : memref<16x128xbf16, #tpu.memory_space<vmem>>, vector<8x128xbf16>,
      %c0_31 = arith.constant 0 : index
      %c0_32 = arith.constant 0 : index
      %58 = vector.load %arg11[%c0_31, %c0_32] : memref<1x128xf32, #tpu.memory_space<vmem>>, vector<1x128xf32>
      %59 = vector.broadcast %58 : vector<1x128xf32> to vector<8x128xf32>
      %60 = arith.subf %39, %59 : vector<8x128xf32>
      %c0_33 = arith.constant 0 : index
      %c0_34 = arith.constant 0 : index
      %61 = vector.load %arg9[%c0_33, %c0_34] : memref<8x128xf32, #tpu.memory_space<vmem>>, vector<8x128xf32>
      %62 = arith.addf %61, %60 : vector<8x128xf32>
      %c0_35 = arith.constant 0 : index
      %c0_36 = arith.constant 0 : index
      %63 = vector.load %arg9[%c0_35, %c0_36] : memref<8x128xf32, #tpu.memory_space<vmem>>, vector<8x128xf32>
      tpu.vector_store %arg9[%c0_35, %c0_36], %62 {strides = array<i32>} : memref<8x128xf32, #tpu.memory_space<vmem>>, vector<8x128xf32>,
      %c0_37 = arith.constant 0 : index
      %c0_38 = arith.constant 0 : index
      %64 = vector.load %arg10[%c0_37, %c0_38] : memref<8x128xf32, #tpu.memory_space<vmem>>, vector<8x128xf32>
      %65 = arith.mulf %60, %60 : vector<8x128xf32>
      %66 = arith.addf %64, %65 : vector<8x128xf32>
      %c0_39 = arith.constant 0 : index
      %c0_40 = arith.constant 0 : index
      %67 = vector.load %arg10[%c0_39, %c0_40] : memref<8x128xf32, #tpu.memory_space<vmem>>, vector<8x128xf32>
      tpu.vector_store %arg10[%c0_39, %c0_40], %66 {strides = array<i32>} : memref<8x128xf32, #tpu.memory_space<vmem>>, vector<8x128xf32>,
    } else {
    }
    %c1_i32_24 = arith.constant 1 : i32
    %45 = arith.cmpi eq, %arg1, %c1_i32_24 : i32
    %46 = arith.andi %40, %45 : i1
    %47 = arith.extui %46 : i1 to i32
    %c0_i32_25 = arith.constant 0 : i32
    %48 = arith.cmpi ne, %47, %c0_i32_25 : i32
    scf.if %48 {
      %c0_i32_28 = arith.constant 0 : i32
      %52 = arith.cmpi eq, %arg1, %c0_i32_28 : i32
      %53 = arith.extui %52 : i1 to i32
      %c0_i32_29 = arith.constant 0 : i32
      %54 = arith.cmpi ne, %53, %c0_i32_29 : i32
      scf.if %54 {
        %78 = vector.extract_strided_slice %39 {offsets = [0, 0], sizes = [1, 128], strides = [1, 1]} : vector<8x128xf32> to vector<1x128xf32>
        %c0_43 = arith.constant 0 : index
        %c0_44 = arith.constant 0 : index
        %79 = vector.load %arg11[%c0_43, %c0_44] : memref<1x128xf32, #tpu.memory_space<vmem>>, vector<1x128xf32>
        tpu.vector_store %arg11[%c0_43, %c0_44], %78 {strides = array<i32>} : memref<1x128xf32, #tpu.memory_space<vmem>>, vector<1x128xf32>,
      } else {
      }
      %55 = arith.truncf %39 : vector<8x128xf32> to vector<8x128xbf16>
      %56 = arith.index_cast %11 : i32 to index
      %c0_30 = arith.constant 0 : index
      %57 = vector.load %arg8[%56, %c0_30] : memref<16x128xbf16, #tpu.memory_space<vmem>>, vector<8x128xbf16>
      tpu.vector_store %arg8[%56, %c0_30], %55 {strides = array<i32>} : memref<16x128xbf16, #tpu.memory_space<vmem>>, vector<8x128xbf16>,
      %c0_31 = arith.constant 0 : index
      %c0_32 = arith.constant 0 : index
      %58 = vector.load %arg11[%c0_31, %c0_32] : memref<1x128xf32, #tpu.memory_space<vmem>>, vector<1x128xf32>
      %59 = vector.broadcast %58 : vector<1x128xf32> to vector<8x128xf32>
      %60 = arith.subf %39, %59 : vector<8x128xf32>
      %61 = tpu.iota {dimensions = array<i32: 0>} : vector<8x1xi32>
      %c8_i32_33 = arith.constant 8 : i32
      %62 = arith.muli %arg1, %c8_i32_33 : i32
      %63 = vector.broadcast %62 : i32 to vector<8x1xi32>
      %64 = arith.addi %61, %63 : vector<8x1xi32>
      %c12_i32 = arith.constant 12 : i32
      %65 = vector.broadcast %c12_i32 : i32 to vector<8x1xi32>
      %66 = arith.cmpi slt, %64, %65 : vector<8x1xi32>
      %cst_34 = arith.constant 0.000000e+00 : f32
      %67 = vector.shape_cast %66 : vector<8x1xi1> to vector<8x1xi1>
      %68 = vector.broadcast %67 : vector<8x1xi1> to vector<8x128xi1>
      %69 = vector.broadcast %cst_34 : f32 to vector<8x128xf32>
      %70 = arith.select %68, %60, %69 : vector<8x128xi1>, vector<8x128xf32>
      %c0_35 = arith.constant 0 : index
      %c0_36 = arith.constant 0 : index
      %71 = vector.load %arg9[%c0_35, %c0_36] : memref<8x128xf32, #tpu.memory_space<vmem>>, vector<8x128xf32>
      %72 = arith.addf %71, %70 : vector<8x128xf32>
      %c0_37 = arith.constant 0 : index
      %c0_38 = arith.constant 0 : index
      %73 = vector.load %arg9[%c0_37, %c0_38] : memref<8x128xf32, #tpu.memory_space<vmem>>, vector<8x128xf32>
      tpu.vector_store %arg9[%c0_37, %c0_38], %72 {strides = array<i32>} : memref<8x128xf32, #tpu.memory_space<vmem>>, vector<8x128xf32>,
      %c0_39 = arith.constant 0 : index
      %c0_40 = arith.constant 0 : index
      %74 = vector.load %arg10[%c0_39, %c0_40] : memref<8x128xf32, #tpu.memory_space<vmem>>, vector<8x128xf32>
      %75 = arith.mulf %70, %70 : vector<8x128xf32>
      %76 = arith.addf %74, %75 : vector<8x128xf32>
      %c0_41 = arith.constant 0 : index
      %c0_42 = arith.constant 0 : index
      %77 = vector.load %arg10[%c0_41, %c0_42] : memref<8x128xf32, #tpu.memory_space<vmem>>, vector<8x128xf32>
      tpu.vector_store %arg10[%c0_41, %c0_42], %76 {strides = array<i32>} : memref<8x128xf32, #tpu.memory_space<vmem>>, vector<8x128xf32>,
    } else {
    }
    %c2_i32_26 = arith.constant 2 : i32
    %49 = arith.cmpi eq, %arg0, %c2_i32_26 : i32
    %50 = arith.extui %49 : i1 to i32
    %c0_i32_27 = arith.constant 0 : i32
    %51 = arith.cmpi ne, %50, %c0_i32_27 : i32
    scf.if %51 {
      %c0_28 = arith.constant 0 : index
      %c0_29 = arith.constant 0 : index
      %52 = vector.load %arg6[%c0_28, %c0_29] : memref<1x128xf32, #tpu.memory_space<vmem>>, vector<1x128xf32>
      %53 = vector.broadcast %52 : vector<1x128xf32> to vector<8x128xf32>
      %54 = arith.addf %39, %53 : vector<8x128xf32>
      %c0_30 = arith.constant 0 : index
      %c0_31 = arith.constant 0 : index
      %55 = vector.load %arg7[%c0_30, %c0_31] : memref<8x128xf32, #tpu.memory_space<vmem>>, vector<8x128xf32>
      tpu.vector_store %arg7[%c0_30, %c0_31], %54 {strides = array<i32>} : memref<8x128xf32, #tpu.memory_space<vmem>>, vector<8x128xf32>,
    } else {
    }
    return
  }
  func.func @transform_0(%arg0: i32, %arg1: i32) -> (i32, i32) {
    %c0_i32 = arith.constant 0 : i32
    %0 = arith.cmpi eq, %arg0, %c0_i32 : i32
    %c0_i32_0 = arith.constant 0 : i32
    %1 = arith.select %0, %arg1, %c0_i32_0 : i32
    %c0_i32_1 = arith.constant 0 : i32
    %c0_i32_2 = arith.constant 0 : i32
    return %1, %c0_i32_1 : i32, i32
  }
  func.func @transform_1(%arg0: i32, %arg1: i32) -> (i32, i32, i32) {
    %c0_i32 = arith.constant 0 : i32
    %c0_i32_0 = arith.constant 0 : i32
    %c0_i32_1 = arith.constant 0 : i32
    return %arg0, %c0_i32, %c0_i32_0 : i32, i32, i32
  }
  func.func @transform_2(%arg0: i32, %arg1: i32) -> (i32, i32, i32) {
    %c0_i32 = arith.constant 0 : i32
    %c0_i32_0 = arith.constant 0 : i32
    %c0_i32_1 = arith.constant 0 : i32
    return %arg0, %c0_i32, %c0_i32_0 : i32, i32, i32
  }
  func.func @transform_3(%arg0: i32, %arg1: i32) -> (i32, i32, i32) {
    %c0_i32 = arith.constant 0 : i32
    %c0_i32_0 = arith.constant 0 : i32
    %c0_i32_1 = arith.constant 0 : i32
    return %arg0, %c0_i32, %c0_i32_0 : i32, i32, i32
  }
  func.func @transform_4(%arg0: i32, %arg1: i32) -> (i32, i32) {
    %c0_i32 = arith.constant 0 : i32
    %c0_i32_0 = arith.constant 0 : i32
    %c0_i32_1 = arith.constant 0 : i32
    return %c0_i32, %c0_i32_0 : i32, i32
  }
  func.func @transform_5(%arg0: i32, %arg1: i32) -> (i32, i32) {
    %c2_i32 = arith.constant 2 : i32
    %0 = arith.cmpi eq, %arg0, %c2_i32 : i32
    %c0_i32 = arith.constant 0 : i32
    %1 = arith.select %0, %arg1, %c0_i32 : i32
    %c0_i32_0 = arith.constant 0 : i32
    %c0_i32_1 = arith.constant 0 : i32
    return %1, %c0_i32_0 : i32, i32
  }
}

</mosaic_0001>

<bundles_post_ra>
// kernel: mlp_forward.1
= control target key start
LH: loop header
LB: loop body
LE: loop exit
PB: predicated region body
PF: predicated region fallthrough
CT: control target
= control target key end

     0   :  { %s1198_s0 = inlined_call_operand.vmem [shape: f32[16,128], index: 0, kind: input, shape index: {}]   ;;  %s1199_s1 = inlined_call_operand.hbm [shape: bf16[3,128,128], index: 1, kind: input, shape index: {}]   ;;  %s1200_s2 = inlined_call_operand.vmem [shape: f32[3,1,128], index: 2, kind: input, shape index: {}]   ;;  %s1201_s3 = inlined_call_operand.vmem [shape: f32[3,1,128], index: 3, kind: input, shape index: {}]   ;;  %s1202_s4 = inlined_call_operand.vmem [shape: f32[1,128], index: 4, kind: input, shape index: {}]   ;;  %s1203_s5 = inlined_call_operand.vmem [shape: f32[16,128], index: 5, kind: output, shape index: {}]  }
   0x1   :  { %1205 = sst [smem:[#allocation12_spill]] %s1199_s1 }
   0x2   :  { %10 = vsyncpa [#allocation9], 0 }
   0x3   :  { %12 = vsyncpa [#allocation9 + $0x1], 0  ;;  %s1001_s18 = smov 0   ;;  %s1003_s19 = smov 0  }
   0x4   :  { %s1005_s20 = smov 0   ;;  %s1007_s21 = smov 0  }
   0x5   :  { %s1009_s22 = smov 0   ;;  %s1011_s23 = smov 0  }
   0x6   :  { %s1013_s24 = smov 0   ;;  %s1015_s25 = smov 0  }
   0x7 LB: > { %s714_s26 = sadd.s32 4294967295, %s961_s25   ;;  %s27_s27 = sadd.s32 1, %s953_s23  ;;  %s961_s25 = sphi %s1015_s25, %s18_s25   ;;  %s957_s24 = sphi %s1013_s24, %s1218_s24   ;;  %s953_s23 = sphi %s1011_s23, %s1217_s23   ;;  %s949_s22 = sphi %s1009_s22, %s1216_s22   ;;  %s945_s21 = sphi %s1007_s21, %s1215_s21   ;;  %s941_s20 = sphi %s1005_s20, %s1214_s20   ;;  %s937_s19 = sphi %s1003_s19, %s1213_s19   ;;  %s933_s18 = sphi %s1001_s18, %s1212_s18  }
   0x8   : > { %p28_p0 = scmp.ge.s32.totalorder %s27_s27, 2  ;;  %s30_s28 = sadd.s32 1, %s957_s24 }
   0x9   : > { %s67_s29 = sadd.s32 1, %s941_s20  ;;  %p74_p1 = scmp.ne.s32.totalorder %s941_s20, %s937_s19 }
   0xa   : > { %s1220_s27 = smov (%p28_p0, %s27_s27), 0  ;;  %s1222_s28 = smov (!%p28_p0, %s30_s28), %s957_s24 }
   0xb   : > { %p75_p2 = scmp.eq.s32.totalorder %s961_s25, 0  ;;  %p80_p3 = scmp.ne.s32.totalorder %s937_s19, %s933_s18 }
   0xc   : > { %p32_p4 = scmp.ge.s32.totalorder %s1222_s28, 3  ;;  %p81_p5 = scmp.eq.s32.totalorder %s714_s26, 0 }
   0xd   : > { %p1050_p6 = por %p75_p2, %p74_p1  ;;  %p785_p8 = scmp.lt.s32.totalorder %s961_s25, 6 }
   0xe   : > { %s1224_s28 = smov (%p32_p4, %s1222_s28), 0  ;;  %p1056_p7 = por %p81_p5, %p80_p3 }
   0xf   : > { %1207 = sst [smem:[#allocation11_spill]] %s1224_s28  ;;  %s64_s7 = ssub.s32 %s957_s24, %s1224_s28 }
  0x10   : > { %s221_s8 = sand.u32 1, %s941_s20   ;;  %p65_p9 = scmp.eq.s32.totalorder %s64_s7, 0 }
  0x11   : > { %s718_s9 = sshll.u32 %s221_s8, 6  ;;  %s749_s10 = sshll.u32 %s957_s24, 10 }
  0x12   : > { %s1066_s11 = scalar_select %p65_p9, %s941_s20, %s67_s29  }
  0x13   : > { %s1209_s1 = sld [smem:[#allocation12_spill]]  ;;  %s225_s15 = scalar_lea.vmem [#allocation8], %s718_s9 }
  0x14   : > { %s232_s16 = sshll.u32 %s225_s15, 4  ;;  %p1073_p10 = pnand %p785_p8, %p1050_p6  ;;  %s233_s16 = int_to_ptr.vmem [resolvable:$true] %s232_s16 }
  0x15   : > { %s222_s18 = scalar_lea.sflag [#allocation9], %s221_s8  ;;  %s880_s26 = scalar_lea.vmem %s233_s16, 1024 }
  0x16   : > { %p869_p11 = pneg %p1073_p10  ;;  %p881_p12 = scmp.ne.s32.totalorder %s233_s16, %s880_s26 }
  0x17   : > { %s963_s29 = smov [#allocation8]  }
  0x18   : > { %p883_p13 = pnand %p881_p12, %p869_p11  ;;  %s885_s7 = sshll.u32 %s963_s29, 4  ;;  %s886_s7 = int_to_ptr.vmem [resolvable:$false] %s885_s7 }
  0x19   : > { %s231_s14 = scalar_lea.hbm %s1209_s1, %s749_s10  ;;  %s887_s10 = scalar_lea.vmem %s886_s7, 2048 }
  0x1a   : > { %p884_p0 = pneg %p883_p13  ;;  %p888_p1 = scmp.lt.s32.totalorder %s233_s16, %s886_s7 }
  0x1b   : > { %p889_p2 = scmp.lt.s32.totalorder %s887_s10, %s880_s26 }
  0x1d   : > { %p890_p3 = por %p889_p2, %p888_p1 }
  0x1f   : > { %p891_p4 = pnand %p890_p3, %p884_p0 }
  0x21   : > { %894 = shalt.err (!%p891_p4)
}
  0x22   : > { %s964_s30 = smov 64   ;;  %s965_s8 = smov 4  }
  0x23   : > { %784 = dma.hbm_to_vmem [thread:$0]  (!%p1073_p10), %s231_s14, 1024, %s233_s16, %s222_s18, %s964_s30, %s964_s30, %s965_s8  }
  0x24   : > { %p721_p5 = scmp.ge.s32.totalorder %s961_s25, 1  ;;  %p252_p6 = scmp.lt.s32.totalorder %s961_s25, 7 }
  0x26   : > { %p253_p8 = pnand %p721_p5, %p252_p6 }
  0x27   : > { %s258_s9 = sand.u32 (!%p253_p8), 1, %s937_s19  }
  0x28   : > { %256 = sbr.rel (%p253_p8) target bundleno = 415 (0x19f), region = 40  ;;  %s722_s12 = sshll.u32 (!%p253_p8), %s258_s9, 6 }
  0x29   : > { %s259_s13 = scalar_lea.sflag (!%p253_p8), [#allocation9], %s258_s9  ;;  %s1084_s15 = scalar_lea.vmem (!%p253_p8), [#allocation8], %s722_s12 }
  0x2d   : > { %928 = dma.done.wait (%p1056_p7), %s259_s13, 1024  }
  0x2e   : > { %930 = vsyncadd (%p1056_p7), %s259_s13, 4294966272  ;;  %p302_p9 = scmp.eq.s32.totalorder %s949_s22, 0  ;;  %p310_p10 = scmp.lt.s32.totalorder %s949_s22, 2 }
  0x2f   : > { %p316_p11 = scmp.eq.s32.totalorder %s949_s22, 2  ;;  %p326_p12 = scmp.eq.s32.totalorder %s945_s21, 0 }
  0x30   : > { %s303_s14 = scalar_select %p302_p9, %s945_s21, 0 }
  0x31   : > { %s1100_s6 = scalar_select %p310_p10, %s949_s22, 2 }
  0x32   : > { %p304_p7 = scmp.lt.s32.totalorder %s303_s14, 1  ;;  %p327_p13 = pnand %p326_p12, %p302_p9 }
  0x33   : > { %s312_s18 = scalar_lea.vmem %s1200_s2, %s1100_s6  ;;  %s315_s7 = scalar_lea.vmem %s1201_s3, %s1100_s6 }
  0x34   : > { %s1226_s14 = smov (!%p304_p7, %s303_s14), 1 }
  0x35   : > { %s317_s10 = scalar_select %p316_p11, %s945_s21, 0 }
  0x36   : > { %s723_s30 = sshll.u32 %s1226_s14, 3 }
  0x37   : > { %s1118_s12 = scalar_lea.vmem %s1198_s0, %s723_s30  ;;  %p318_p0 = scmp.lt.s32.totalorder %s317_s10, 1 }
  0x38   : > { %330 = sbr.rel (%p327_p13) target bundleno = 64 (0x40), region = 48 }
  0x39   : > { %s1228_s10 = smov (!%p318_p0, %s317_s10), 1 }
  0x3a   : > { %s724_s13 = sshll.u32 %s1228_s10, 3 }
  0x3b   : > { %s1123_s16 = scalar_lea.vmem %s1203_s5, %s724_s13 }
  0x3d   : > { %v966_v0 = vmov 0.0   ;;  %v967_v1 = vmov 1.0  }
  0x3e   : > { %331 = vst [vmem:[#allocation3] sm:$0xff] %v966_v0  ;;  %332 = vst [vmem:[#allocation4] sm:$0xff] %v966_v0 }
  0x3f   : > { %333 = vst [vmem:[#allocation6] sm:$0x1] %v966_v0  ;;  %334 = vst [vmem:[#allocation7] sm:$0x1] %v967_v1 }
  0x40 PF: > { %p335_p1 = scmp.gt.s32.totalorder %s949_s22, 0 }
  0x42   : > { %p336_p2 = pnand %p335_p1, %p326_p12 }
  0x44   : > { %339 = sbr.rel (%p336_p2) target bundleno = 111 (0x6f), region = 52 }
  0x49   : > { %v340_v2 = vld [vmem:[#allocation3] sm:$0xff]  ;;  %v348_v3 = vld [vmem:[#allocation4] sm:$0xff]  ;;  %v968_v6 = vmov 0.0   ;;  %v359_v17 = vld [vmem:[#allocation5] sm:$0x1] }
  0x4a   : > { %v341_v4 = vrot.slane %v340_v2, 4  ;;  %v349_v5 = vrot.slane %v348_v3, 4  ;;  %365 = vst [vmem:[#allocation3] sm:$0xff] %v968_v6  ;;  %366 = vst [vmem:[#allocation4] sm:$0xff] %v968_v6 }
  0x4c   : > { %v342_v7 = vadd.f32 %v341_v4, %v340_v2  ;;  %v350_v8 = vadd.f32 %v349_v5, %v348_v3 }
  0x4e   : > { %v343_v9 = vrot.slane %v342_v7, 2  ;;  %v351_v10 = vrot.slane %v350_v8, 2 }
  0x50   : > { %v344_v11 = vadd.f32 %v343_v9, %v342_v7  ;;  %v352_v12 = vadd.f32 %v351_v10, %v350_v8 }
  0x52   : > { %v345_v13 = vrot.slane %v344_v11, 1  ;;  %v353_v14 = vrot.slane %v352_v12, 1 }
  0x54   : > { %v346_v15 = vadd.f32 %v345_v13, %v344_v11  ;;  %v354_v16 = vadd.f32 %v353_v14, %v352_v12 }
  0x56   : > { %v347_v18 = vmul.f32 0.083333336, %v346_v15  ;;  %v355_v19 = vmul.f32 0.083333336, %v354_v16 }
  0x58   : > { %v356_v20 = vmul.f32 %v347_v18, %v347_v18  ;;  %v360_v21 = vadd.f32 %v359_v17, %v347_v18 }
  0x5a   : > { %361 = vst [vmem:[#allocation6] sm:$0x1] %v360_v21  ;;  %v357_v22 = vsub.f32 %v355_v19, %v356_v20 }
  0x5c   : > { %v358_v23 = vmax.f32 %v357_v22, 0.0 }
  0x5e   : > { %v362_v24 = vadd.f32 1e-05, %v358_v23 }
  0x60   : > { %857 = vrsqrt.f32 %v362_v24 }
  0x6d   : > { %v858_v25 = vpop.eup %857 }
  0x6e   : > { %364 = vst [vmem:[#allocation7] sm:$0x1] %v858_v25 }
  0x6f PF: > { %s1129_s1 = sshll.u32 %s945_s21, 3  ;;  %p726_p3 = scmp.ne.s32.totalorder %s949_s22, 0 }
  0x70   : > { %s373_s28 = sshra.s32 (!%p726_p3), %s1129_s1, 3 }
  0x71   : > { %370 = sbr.rel (%p726_p3) target bundleno = 122 (0x7a), region = 56  ;;  %s727_s14 = sshll.u32 (!%p726_p3), %s373_s28, 2 }
  0x72   : > { %s376_s17 = scalar_lea.vmem (!%p726_p3), [#allocation2], %s727_s14 }
  0x76   : > { %v371_v26 = vld [vmem:[%s1118_s12] sm:$0xff] }
  0x77   : > { %v372_v27 = vpack.c.bf16 %v371_v26, %v371_v26 }
  0x79   : > { %377 = vst [vmem:[%s376_s17] sm:$0xf] %v372_v27 }
  0x7a PF: > { %v859_v28 = vld [vmem:[%s1084_s15 + $0x38] sm:$0xff]   ;;  %v969_v29 = vmov 0.0   ;;  %v860_v30 = vld [vmem:[%s1084_s15 + $0x30] sm:$0xff]   ;;  %vm970_vm0 = vmmov 0   ;;  %s378_s26 = sshra.s32 %s1129_s1, 3  ;;  %v861_v31 = vld [vmem:[%s1084_s15 + $0x28] sm:$0xff]  }
  0x7b   : > { %759 = vmatprep.subr.bf16.mxu0 %v969_v29  ;;  %775 = vmatprep.mubr.msk.bf16.mxu0 %vm970_vm0, %v969_v29  ;;  %s728_s29 = sshll.u32 %s378_s26, 2  ;;  %v729_v34 = vld [vmem:[#allocation6] ss:$0 sm:$0xff]  ;;  %v862_v35 = vld [vmem:[%s1084_s15 + $0x20] sm:$0xff]   ;;  %v730_v36 = vld [vmem:[#allocation7] ss:$0 sm:$0xff] }
  0x7c   : > { %760 = vmatpush3.bf16.msra.mxu0 %v859_v28  ;;  %s1138_s10 = scalar_lea.vmem [#allocation2], %s728_s29  ;;  %v863_v39 = vld [vmem:[%s1084_s15 + $0x18] sm:$0xff]   ;;  %v731_v40 = vld [vmem:[%s312_s18] ss:$0 sm:$0xff]  ;;  %v864_v42 = vld [vmem:[%s1084_s15 + $0x10] sm:$0xff]   ;;  %p525_p4 = scmp.lt.s32.totalorder %s945_s21, 1 }
  0x7d   : > { %761 = vmatprep.subr.bf16.mxu0 %v969_v29  ;;  %s384_s9 = scalar_select %p302_p9, -3.4028235e+38, 0.0  ;;  %v732_v43 = vld [vmem:[%s315_s7] ss:$0 sm:$0xff]  ;;  %v865_v45 = vld [vmem:[%s1084_s15 + $0x8] sm:$0xff]  }
  0x7e   : > { %v866_v48 = vld [vmem:[%s1084_s15] sm:$0xff]   ;;  %p526_p5 = pnand %p525_p4, %p310_p10 }
  0x7f   : > { %v417_v46 = vstv %s384_s9  ;;  %p741_p6 = scmp.ne.s32.totalorder (!%p526_p5), %s945_s21, 0 }
  0x80   : > { %762 = vmatpush3.bf16.msra.mxu0 %v860_v30  ;;  %v382_v32 = vld [vmem:[%s1138_s10] sm:$0xf] }
  0x81   : > { %763 = vmatprep.subr.bf16.mxu0 %v969_v29  ;;  %v383_v33 = vunpack.c.l.bf16 %v382_v32 }
  0x83   : > { %v392_v37 = vsub.f32 %v383_v33, %v729_v34 }
  0x84   : > { %764 = vmatpush3.bf16.msra.mxu0 %v861_v31 }
  0x85   : > { %765 = vmatprep.subr.bf16.mxu0 %v969_v29  ;;  %v400_v38 = vmul.f32 %v730_v36, %v392_v37 }
  0x87   : > { %v408_v41 = vmul.f32 %v731_v40, %v400_v38 }
  0x88   : > { %766 = vmatpush3.bf16.msra.mxu0 %v862_v35 }
  0x89   : > { %767 = vmatprep.subr.bf16.mxu0 %v969_v29  ;;  %v416_v44 = vadd.f32 %v732_v43, %v408_v41 }
  0x8b   : > { %v418_v47 = vmax.f32 %v416_v44, %v417_v46 }
  0x8c   : > { %768 = vmatpush3.bf16.msra.mxu0 %v863_v39 }
  0x8d   : > { %769 = vmatprep.subr.bf16.mxu0 %v969_v29  ;;  %v419_v49 = vpack.c.bf16 %v418_v47, %v418_v47 }
  0x90   : > { %770 = vmatpush3.bf16.msra.mxu0 %v864_v42 }
  0x91   : > { %771 = vmatprep.subr.bf16.mxu0 %v969_v29 }
  0x94   : > { %772 = vmatpush3.bf16.msra.mxu0 %v865_v45 }
  0x95   : > { %773 = vmatprep.subr.bf16.mxu0 %v969_v29 }
  0x98   : > { %774 = vmatpush3.bf16.msra.mxu0 %v866_v48 }
  0x9b   : > { %776 = vmatmul.mubr.bf16.vlgmr.msra.gmra.mxu0 %v419_v49 }
 0x15b   : > { %v518_v50 = vpop.f32.mrf.mxu0 }
 0x15d   : > { %v777_v51 = vpop.f32.mrf.mxu0  ;;  %529 = sbr.rel (%p526_p5) target bundleno = 374 (0x176), region = 60 }
 0x15f   : > { %v521_v52 = vpop.f32.mrf.mxu0 }
 0x161   : > { %v778_v53 = vpop.f32.mrf.mxu0 }
 0x162   : > { %532 = sbr.rel (%p741_p6) target bundleno = 360 (0x168), region = 64 }
 0x167   : > { %533 = vst [vmem:[#allocation5] sm:$0x1] %v518_v50 }
 0x168 PF: > { %v534_v54 = vpack.c.bf16 %v518_v50, %v518_v50  ;;  %v544_v56 = vld [vmem:[#allocation3] sm:$0xff]  ;;  %v547_v58 = vld [vmem:[#allocation4] sm:$0xff] }
 0x16a   : > { %535 = vst [vmem:[%s1138_s10] sm:$0xf] %v534_v54 }
 0x16e   : > { %v742_v55 = vld [vmem:[#allocation5] ss:$0 sm:$0xff] }
 0x16f   : > { %v543_v57 = vsub.f32 %v518_v50, %v742_v55 }
 0x171   : > { %v545_v59 = vadd.f32 %v544_v56, %v543_v57  ;;  %v548_v60 = vmul.f32 %v543_v57, %v543_v57 }
 0x173   : > { %546 = vst [vmem:[#allocation3] sm:$0xff] %v545_v59  ;;  %v549_v61 = vadd.f32 %v548_v60, %v547_v58 }
 0x175   : > { %550 = vst [vmem:[#allocation4] sm:$0xff] %v549_v61 }
 0x176 PF: > { %p551_p8 = scmp.eq.s32.totalorder %s945_s21, 1 }
 0x178   : > { %p552_p9 = pnand %p551_p8, %p310_p10 }
 0x179   : > { %p743_p11 = scmp.ne.s32.totalorder (!%p552_p9), %s945_s21, 0 }
 0x17a   : > { %555 = sbr.rel (%p552_p9) target bundleno = 404 (0x194), region = 68 }
 0x17f   : > { %558 = sbr.rel (%p743_p11) target bundleno = 389 (0x185), region = 72 }
 0x184   : > { %559 = vst [vmem:[#allocation5] sm:$0x1] %v518_v50 }
 0x185 PF: > { %v560_v62 = vpack.c.bf16 %v518_v50, %v518_v50  ;;  %v570_v0 = vlaneseq  ;;  %v572_v1 = vstv %s1129_s1  ;;  %v578_v5 = vld [vmem:[#allocation3] sm:$0xff]  ;;  %v581_v7 = vld [vmem:[#allocation4] sm:$0xff] }
 0x187   : > { %561 = vst [vmem:[%s1138_s10] sm:$0xf] %v560_v62  ;;  %v571_v2 = vshrl.u32 %v570_v0, 7 }
 0x189   : > { %v573_v4 = vadd.s32 %v572_v1, %v571_v2 }
 0x18b   : > { %v744_v63 = vld [vmem:[#allocation5] ss:$0 sm:$0xff]  ;;  %vm574_vm1 = vcmp.lt.s32.totalorder %v573_v4, 12 }
 0x18c   : > { %v569_v3 = vsub.f32 %v518_v50, %v744_v63 }
 0x18e   : > { %v577_v6 = vsel %vm574_vm1, %v569_v3, 0.0 }
 0x18f   : > { %v579_v8 = vadd.f32 %v578_v5, %v577_v6  ;;  %v582_v9 = vmul.f32 %v577_v6, %v577_v6 }
 0x191   : > { %580 = vst [vmem:[#allocation3] sm:$0xff] %v579_v8  ;;  %v583_v10 = vadd.f32 %v582_v9, %v581_v7 }
 0x193   : > { %584 = vst [vmem:[#allocation4] sm:$0xff] %v583_v10 }
 0x194 PF: > { %p745_p10 = scmp.ne.s32.totalorder %s949_s22, 2 }
 0x196   : > { %588 = sbr.rel (%p745_p10) target bundleno = 415 (0x19f), region = 76 }
 0x19b   : > { %v746_v11 = vld [vmem:[%s1202_s4] ss:$0 sm:$0xff] }
 0x19c   : > { %v596_v12 = vadd.f32 %v746_v11, %v518_v50 }
 0x19e   : > { %597 = vst [vmem:[%s1123_s16] sm:$0xff] %v596_v12 }
 0x19f PF: > { %s18_s25 = sadd.s32 1, %s961_s25   ;;  %s1211_s6 = sld [smem:[#allocation11_spill]] }
 0x1a0   : > { %p15_p12 = scmp.ge.s32.totalorder %s18_s25, 8   ;;  %s1212_s18 = smov %s937_s19 }
 0x1a1   : > { %s1213_s19 = smov %s941_s20  ;;  %s1214_s20 = smov %s1066_s11 }
 0x1a2   : > { %s1215_s21 = smov %s953_s23  ;;  %s1216_s22 = smov %s957_s24 }
 0x1a3   : > { %s1217_s23 = smov %s1220_s27  ;;  %17 = sbr.rel (!%p15_p12) target bundleno = 7 (0x7), region = 123 }
 0x1a5   : > { %s1218_s24 = smov %s1211_s6 }
 0x1a8   :  { %623 = vsyncpa [#allocation9], 1 }
 0x1a9   :  { %625 = vsyncpa [#allocation9 + $0x1], 1 }

</bundles_post_ra>
